<compile_context>
chip_gen: v5e
topology: v5e:2x2
jax: 0.10.0
libtpu: 0.0.40
codegen_flags: <defaults>
</compile_context>

<pallas_src>
import functools

import jax
import jax.numpy as jnp
from jax import lax
from jax.experimental import pallas as pl
from jax.experimental.pallas import tpu as pltpu


# --------------------------------------------------------------------------- #
# Kernel 1: attention / p_gen / out1 for a tile of decoder rows
# --------------------------------------------------------------------------- #
def _setup_kernel(
    ef_ref,      # (1, Te, H)  enc_feat = e_out @ W_h   (f32, hoisted to wrapper)
    e_ref,       # (1, Te, H)  encoder_last_hidden_state
    d_ref,       # (1, TS, H)  decoder last_hidden_state tile
    emb_ref,     # (1, TS, H)  bart.shared(decoder_input) tile
    mask_ref,    # (1, 1, Te)  encoder padding mask (float)
    # -------- weights ([in, out] layout) --------
    wdp_ref, bdp_ref,                          # (H, H), (1, H)  Attention.decode_proj
    v_ref,                                     # (1, H)          Attention.v
    wpg_h_ref, wpg_d_ref, wpg_e_ref, bpg_ref,  # (1,H)x3, (1,1)  p_gen_linear rows
    w1_d_ref, w1_h_ref, b1_ref,                # (H,H), (H,H), (1,H)  out1 (split)
    # -------- outputs --------
    h1_ref,      # (1, TS, H)   out1 activations (compute dtype)
    pattn_ref,   # (1, TS, Te)  (1 - p_gen) * attn (compute dtype)
    pgen_ref,    # (1, TS, 1)   p_gen (f32)
    # -------- scratch --------
    decf_scr,    # (TS, H)   decode_proj activations, f32
    scores_scr,  # (TS, Te)  additive-attention scores, f32
    *, row_chunk,
):
    f32 = jnp.float32
    cdt = h1_ref.dtype                          # MXU compute dtype (bf16 when inputs are)
    ts, te = scores_scr.shape

    d = d_ref[0]                                # (TS, H)  input dtype
    emb = emb_ref[0]                            # (TS, H)
    mask = mask_ref[0].astype(f32)              # (1, Te)
    v_row = v_ref[...].astype(f32)              # (1, H)

    # decode_proj for the whole tile (one MXU matmul), staged in VMEM so the
    # chunk loop can slice it along sublanes.
    decf_scr[...] = (jnp.dot(d, wdp_ref[...], preferred_element_type=f32)
                     + bdp_ref[...].astype(f32))

    # Additive-attention scores, chunked over decoder rows so the
    # (row_chunk, Te, H) tanh intermediate stays bounded at real shapes.
    def _score_chunk(r, carry):
        r0 = pl.multiple_of(r * row_chunk, row_chunk)
        df = decf_scr[pl.ds(r0, row_chunk), :]                      # (rc, H)  f32
        att = df[:, None, :] + ef_ref[0][None, :, :]                # (rc, Te, H)
        scores_scr[pl.ds(r0, row_chunk), :] = jnp.sum(
            jnp.tanh(att) * v_row[None], axis=-1)                   # (rc, Te)
        return carry

    lax.fori_loop(0, ts // row_chunk, _score_chunk, 0)

    scores = scores_scr[...]                                        # (TS, Te)
    smax = jnp.max(scores, axis=-1, keepdims=True)
    ex = jnp.exp(scores - smax)
    sm = ex / jnp.sum(ex, axis=-1, keepdims=True)                   # exact division
    attn_m = sm * mask
    attn = attn_m / jnp.sum(attn_m, axis=-1, keepdims=True)         # (TS, Te)

    e = e_ref[0]                                                    # (Te, H)
    ht = jnp.dot(attn.astype(cdt), e, preferred_element_type=f32)   # (TS, H) f32

    # p_gen as a lane reduction (no N=1 MXU matmuls); sigmoid via EUP tanh.
    pg_logit = (jnp.sum(ht * wpg_h_ref[...].astype(f32)
                        + d.astype(f32) * wpg_d_ref[...].astype(f32)
                        + emb.astype(f32) * wpg_e_ref[...].astype(f32),
                        axis=-1, keepdims=True)
                + bpg_ref[...].astype(f32))                         # (TS, 1)
    p_gen = 0.5 * jnp.tanh(0.5 * pg_logit) + 0.5

    h1 = (jnp.dot(d, w1_d_ref[...], preferred_element_type=f32)
          + jnp.dot(ht.astype(cdt), w1_h_ref[...], preferred_element_type=f32)
          + b1_ref[...].astype(f32))                                # (TS, H)

    h1_ref[0] = h1.astype(cdt)
    pattn_ref[0] = ((1.0 - p_gen) * attn).astype(cdt)
    pgen_ref[0] = p_gen


# --------------------------------------------------------------------------- #
# Kernel 2: vocab sweep (streamed W2, cached logits, label-smoothed NLL)
# --------------------------------------------------------------------------- #
def _vocab_kernel(
    flags_ref,   # SMEM (B, NV) int32: 1 if any encoder id falls in that vocab tile
    h1_ref,      # (1, TQ, H)   out1 activations (compute dtype)
    pattn_ref,   # (1, TQ, Te)  (1 - p_gen) * attn
    pgen_ref,    # (1, TQ, 1)   p_gen f32
    lab_ref,     # (1, TQ, 1)   labels (int32, -1 = ignore)
    encid_ref,   # (1, Te, 1)   encoder token ids (int32)
    w2_ref,      # (1, H, TILE_V)  out2 weight slab (streamed, contiguous)
    b2_ref,      # (1, 1, TILE_V)  out2 bias slab
    loss_ref,    # (1, TQ, 1)   per-position label-smoothed NLL
    # -------- scratch (persists across the pass / vocab grid axes) --------
    logits_scr,  # (NV, TQ, TILE_V)  cached logits (compute dtype)
    m_scr,       # (TQ, 1) running row max      f32
    s_scr,       # (TQ, 1) running row sum-exp  f32
    loss_scr,    # (TQ, 1) loss accumulator     f32
    *, lb_smooth, vocab_size,
):
    f32 = jnp.float32
    b = pl.program_id(0)
    pid_p = pl.program_id(2)            # 0: stats pass, 1: loss pass
    pid_v = pl.program_id(3)            # vocab tile index
    num_v = pl.num_programs(3)
    tq = h1_ref.shape[1]
    tile_v = w2_ref.shape[2]
    te = encid_ref.shape[1]
    cdt = logits_scr.dtype

    @pl.when(jnp.logical_and(pid_p == 0, pid_v == 0))
    def _init():
        m_scr[...] = jnp.full_like(m_scr, -jnp.inf)
        s_scr[...] = jnp.zeros_like(s_scr)
        loss_scr[...] = jnp.zeros_like(loss_scr)

    # ---- pass 0: stream this W2 slab once, cache logits, online softmax ----
    @pl.when(pid_p == 0)
    def _stats():
        logits = (jnp.dot(h1_ref[0], w2_ref[0], preferred_element_type=f32)
                  + b2_ref[0].astype(f32))                      # (TQ, TILE_V)
        logits_scr[pid_v] = logits.astype(cdt)
        m_prev = m_scr[...]
        m_new = jnp.maximum(m_prev, jnp.max(logits, axis=-1, keepdims=True))
        s_scr[...] = (s_scr[...] * jnp.exp(m_prev - m_new)
                      + jnp.sum(jnp.exp(logits - m_new), axis=-1, keepdims=True))
        m_scr[...] = m_new

    # ---- pass 1: loss from cached logits (no W2 traffic, no second matmul) --
    @pl.when(pid_p == 1)
    def _loss():
        labels = lab_ref[0]                                     # (TQ, 1) int32
        v0 = pid_v * tile_v
        logits = logits_scr[pid_v].astype(f32)                  # (TQ, TILE_V)
        inv_s = pl.reciprocal(s_scr[...], approx=True)
        vocab_prob = jnp.exp(logits - m_scr[...]) * inv_s
        gen_prob = pgen_ref[0] * vocab_prob                     # (TQ, TILE_V)

        iota_tv = lax.broadcasted_iota(jnp.int32, (tq, tile_v), 1)
        lab_onehot = iota_tv == (labels - v0)
        lb_neg = lb_smooth / vocab_size
        lb_pos = 1.0 - lb_smooth

        def _accum(final):
            # algebraic label smoothing:
            #   loss += lb_neg * sum_v log(final) + (lb_pos - lb_neg) * log(final[label])
            logf = jnp.log(jnp.maximum(final, 1e-30))           # epsilon: no -inf poisoning
            logf_lab = jnp.sum(jnp.where(lab_onehot, logf, 0.0),
                               axis=-1, keepdims=True)
            loss_scr[...] += (lb_neg * jnp.sum(logf, axis=-1, keepdims=True)
                              + (lb_pos - lb_neg) * logf_lab)

        # skip the pointer one-hot matmul for vocab tiles with no encoder ids
        has_ptr = flags_ref[b, pid_v] > 0

        @pl.when(has_ptr)
        def _with_pointer():
            enc_ids = encid_ref[0]                              # (Te, 1) int32
            iota_ev = lax.broadcasted_iota(jnp.int32, (te, tile_v), 1)
            onehot = (iota_ev == (enc_ids - v0)).astype(cdt)    # (Te, TILE_V)
            ptr = jnp.dot(pattn_ref[0], onehot, preferred_element_type=f32)
            _accum(gen_prob + ptr)

        @pl.when(jnp.logical_not(has_ptr))
        def _no_pointer():
            _accum(gen_prob)

        @pl.when(pid_v == num_v - 1)
        def _finalize():
            loss_ref[0] = jnp.where(labels == -1, 0.0, -loss_scr[...])


# --------------------------------------------------------------------------- #
# Wrapper
# --------------------------------------------------------------------------- #
def _clamp_vmem(x):
    return int(min(max(int(x), 16 << 20), 96 << 20))


def pgn_pallas_loss(e_out, d_out, dec_emb, enc_mask, enc_ids, labels, params,
                    lb_smooth=0.1, ts=None, tq=None, tile_v=None, row_chunk=None,
                    vmem_limit_bytes=None):
    """Scalar PGNModel loss (non-coverage path)."""
    B, Te, H = e_out.shape
    Td = d_out.shape[1]
    V = params["W2"].shape[1]
    f32 = jnp.float32
    cdt = d_out.dtype                    # MXU compute dtype (bf16 recommended)
    cdt_bytes = d_out.dtype.itemsize

    ts = min(ts or 128, Td)              # setup-kernel decoder-row tile
    tq = min(tq or 256, Td)              # vocab-sweep decoder-row tile (W2 amortization)
    tile_v = min(tile_v or 2048, V)      # streamed W2 slab width
    assert Td % ts == 0 and (ts % 8 == 0 or ts == Td), (Td, ts)
    assert Td % tq == 0 and (tq % 8 == 0 or tq == Td), (Td, tq)
    assert V % tile_v == 0 and (tile_v % 128 == 0 or tile_v == V), (V, tile_v)
    if row_chunk is None:
        # keep the (row_chunk, Te, H) f32 tanh intermediate around ~2 MB
        row_chunk = max(1, min(ts, (2 * 1024 * 1024) // max(1, Te * H * 4)))
    while ts % row_chunk:
        row_chunk -= 1
    nv = V // tile_v
    nt_s = Td // ts
    nt_q = Td // tq

    # ---- hoisted per-batch encoder projection (W_h never enters the kernels) --
    enc_feat = jnp.einsum("beh,hk->bek", e_out.astype(f32), params["W_h"].astype(f32))

    setup_weights = [params[k].astype(cdt) for k in
                     ("W_dp", "b_dp", "v", "Wpg_h", "Wpg_d", "Wpg_e", "b_pg",
                      "W1_d", "W1_h", "b1")]

    # ---- VMEM budgets derived from actual buffer sizes (double-buffered) -----
    if vmem_limit_bytes is None:
        weights_bytes = sum(int(w.size) for w in setup_weights) * cdt_bytes
        setup_vmem = (2 * (Te * H * (4 + cdt_bytes)
                           + 2 * ts * H * cdt_bytes + Te * 4 + weights_bytes
                           + ts * (H + Te) * cdt_bytes + ts * 4)
                      + ts * (H + Te) * 4
                      + 2 * row_chunk * Te * H * 4 + (8 << 20))
        vocab_vmem = (2 * (tq * (H + Te) * cdt_bytes + 3 * tq * 4 + Te * 4
                           + (H + 1) * tile_v * cdt_bytes + tq * 4)
                      + nv * tq * tile_v * cdt_bytes
                      + 2 * tq * tile_v * 4 + (8 << 20))
    else:
        setup_vmem = vocab_vmem = vmem_limit_bytes
    setup_vmem = _clamp_vmem(setup_vmem)
    vocab_vmem = _clamp_vmem(vocab_vmem)

    # ----------------------------- setup pallas_call --------------------------
    enc_map = lambda b, t: (b, 0, 0)
    dec_map = lambda b, t: (b, t, 0)
    w_map = lambda b, t: (0, 0)

    setup_gs = pltpu.PrefetchScalarGridSpec(
        num_scalar_prefetch=0,
        grid=(B, nt_s),
        in_specs=[pl.BlockSpec((1, Te, H), enc_map),     # enc_feat (f32)
                  pl.BlockSpec((1, Te, H), enc_map),     # encoder hidden states
                  pl.BlockSpec((1, ts, H), dec_map),     # decoder hidden states
                  pl.BlockSpec((1, ts, H), dec_map),     # decoder token embeddings
                  pl.BlockSpec((1, 1, Te), enc_map)]     # encoder padding mask
                 + [pl.BlockSpec(w.shape, w_map) for w in setup_weights],
        out_specs=(pl.BlockSpec((1, ts, H), dec_map),
                   pl.BlockSpec((1, ts, Te), dec_map),
                   pl.BlockSpec((1, ts, 1), dec_map)),
        scratch_shapes=[pltpu.VMEM((ts, H), f32),
                        pltpu.VMEM((ts, Te), f32)],
    )

    mask3 = enc_mask.reshape(B, 1, Te).astype(f32)
    h1, pattn, pgen = pl.pallas_call(
        functools.partial(_setup_kernel, row_chunk=row_chunk),
        out_shape=(jax.ShapeDtypeStruct((B, Td, H), cdt),
                   jax.ShapeDtypeStruct((B, Td, Te), cdt),
                   jax.ShapeDtypeStruct((B, Td, 1), f32)),
        grid_spec=setup_gs,
        compiler_params=pltpu.CompilerParams(
            dimension_semantics=("parallel", "parallel"),
            vmem_limit_bytes=setup_vmem),
    )(enc_feat, e_out, d_out, dec_emb, mask3, *setup_weights)

    # ----------------------------- vocab pallas_call --------------------------
    # W2 pre-reshaped so each (H, TILE_V) slab is a single contiguous DMA.
    w2r = params["W2"].astype(cdt).reshape(H, nv, tile_v).transpose(1, 0, 2)
    b2r = params["b2"].astype(cdt).reshape(nv, 1, tile_v)

    enc_ids_i = enc_ids.astype(jnp.int32)
    labels_i = labels.astype(jnp.int32)
    enc_ids_r = enc_ids_i.reshape(B, Te, 1)
    labels_r = labels_i.reshape(B, Td, 1)

    # scalar-prefetched per-(batch, vocab-tile) pointer flags
    tile_of_id = enc_ids_i // tile_v                                   # (B, Te)
    flags = jnp.any(tile_of_id[:, :, None]
                    == jnp.arange(nv, dtype=jnp.int32)[None, None, :],
                    axis=1).astype(jnp.int32)                          # (B, NV)

    vq_map = lambda b, t, p, v, fl: (b, t, 0)
    venc_map = lambda b, t, p, v, fl: (b, 0, 0)
    # W2/b2 stream on pass 0 only; on pass 1 the block index is frozen so the
    # slab is not re-fetched (logits come from the VMEM cache).
    w2_map = lambda b, t, p, v, fl: (v * (1 - p) + (nv - 1) * p, 0, 0)

    vocab_gs = pltpu.PrefetchScalarGridSpec(
        num_scalar_prefetch=1,
        grid=(B, nt_q, 2, nv),
        in_specs=[pl.BlockSpec((1, tq, H), vq_map),      # h1
                  pl.BlockSpec((1, tq, Te), vq_map),     # (1 - p_gen) * attn
                  pl.BlockSpec((1, tq, 1), vq_map),      # p_gen
                  pl.BlockSpec((1, tq, 1), vq_map),      # labels
                  pl.BlockSpec((1, Te, 1), venc_map),    # encoder ids
                  pl.BlockSpec((1, H, tile_v), w2_map),  # W2 slab
                  pl.BlockSpec((1, 1, tile_v), w2_map)], # b2 slab
        out_specs=pl.BlockSpec((1, tq, 1), vq_map),
        scratch_shapes=[pltpu.VMEM((nv, tq, tile_v), cdt),   # logits cache
                        pltpu.VMEM((tq, 1), f32),            # running max
                        pltpu.VMEM((tq, 1), f32),            # running sum-exp
                        pltpu.VMEM((tq, 1), f32)],           # loss accumulator
    )

    loss_mat = pl.pallas_call(
        functools.partial(_vocab_kernel, lb_smooth=lb_smooth, vocab_size=V),
        out_shape=jax.ShapeDtypeStruct((B, Td, 1), f32),
        grid_spec=vocab_gs,
        compiler_params=pltpu.CompilerParams(
            dimension_semantics=("parallel", "parallel", "arbitrary", "arbitrary"),
            vmem_limit_bytes=vocab_vmem),
    )(flags, h1, pattn, pgen, labels_r, enc_ids_r, w2r, b2r)

    n_valid = jnp.sum((labels_i != -1).astype(f32))
    return jnp.sum(loss_mat) / n_valid


# ----------------------------- pure-JAX reference -----------------------------
def pgn_ref_loss(e_out, d_out, dec_emb, enc_mask, enc_ids, labels, p,
                 lb_smooth=0.1):
    f32 = jnp.float32
    e_out, d_out, dec_emb = e_out.astype(f32), d_out.astype(f32), dec_emb.astype(f32)
    p = {k: v.astype(f32) for k, v in p.items()}
    V = p["W2"].shape[1]
    enc_feat = e_out @ p["W_h"]
    dec_fea = d_out @ p["W_dp"] + p["b_dp"]
    att = enc_feat[:, None, :, :] + dec_fea[:, :, None, :]
    scores = jnp.sum(jnp.tanh(att) * p["v"][None, None], axis=-1)
    sm = jax.nn.softmax(scores, axis=-1)
    attn_ = sm * enc_mask[:, None, :].astype(f32)
    attn = attn_ / attn_.sum(-1, keepdims=True)
    ht = jnp.einsum("bte,beh->bth", attn, e_out)
    pg = jax.nn.sigmoid(jnp.sum(ht * p["Wpg_h"] + d_out * p["Wpg_d"]
                                + dec_emb * p["Wpg_e"], -1, keepdims=True)
                        + p["b_pg"])
    h1 = d_out @ p["W1_d"] + ht @ p["W1_h"] + p["b1"]
    logits = h1 @ p["W2"] + p["b2"]
    vocab = jax.nn.softmax(logits, axis=-1)
    onehot = jax.nn.one_hot(enc_ids, V, dtype=f32)
    final = pg * vocab + jnp.einsum("bte,bev->btv", (1.0 - pg) * attn, onehot)
    ignore = labels == -1
    lab0 = jnp.where(ignore, 0, labels)
    lb_pos, lb_neg = 1.0 - lb_smooth, lb_smooth / V
    lb = lb_neg + (lb_pos - lb_neg) * jax.nn.one_hot(lab0, V, dtype=f32)
    loss = -jnp.sum(jnp.log(final) * lb, axis=-1)
    loss = jnp.where(ignore, 0.0, loss)
    return loss.sum() / (~ignore).sum()


# ------------------------- deterministic parameters ---------------------------
def xavier(key, fan_in, fan_out, shape):
    std = (2.0 / (fan_in + fan_out)) ** 0.5
    return std * jax.random.normal(key, shape, dtype=jnp.float32)


def make_params(key, H, V):
    ks = jax.random.split(key, 8)
    wpg = xavier(ks[3], 3 * H, 1, (3, H))      # p_gen_linear rows: [ht | d | emb]
    w1 = xavier(ks[4], 2 * H, H, (2 * H, H))
    return {
        "W_h":  xavier(ks[0], H, H, (H, H)),
        "W_dp": xavier(ks[1], H, H, (H, H)),
        "b_dp": jnp.zeros((1, H), jnp.float32),
        "v":    xavier(ks[2], H, 1, (1, H)),
        "Wpg_h": wpg[0:1], "Wpg_d": wpg[1:2], "Wpg_e": wpg[2:3],
        "b_pg": jnp.zeros((1, 1), jnp.float32),
        "W1_d": w1[:H], "W1_h": w1[H:],
        "b1":   jnp.zeros((1, H), jnp.float32),
        "W2":   xavier(ks[5], H, V, (H, V)),
        "b2":   jnp.zeros((1, V), jnp.float32),
        "emb_table": 0.02 * jax.random.normal(ks[6], (V, H), jnp.float32),
    }


if __name__ == "__main__":
    # Small shapes chosen so the setup row tiling (2 tiles of 8 with a 2-step
    # row-chunk loop) and the vocab sweep (2 streamed slabs of 128, 2 passes,
    # pointer-flag prefetch) all exercise the tiled structure.
    B, Te, Td, H, V = 2, 16, 16, 32, 256
    TS, TQ, TILE_V, ROW_CHUNK = 8, 16, 128, 4

    key = jax.random.PRNGKey(0)
    kp, k1, k2, k3, k4, k5 = jax.random.split(key, 6)
    params = make_params(kp, H, V)

    # synthetic BART hidden states (stand-in for bart(...) outputs)
    e_out = jax.random.normal(k1, (B, Te, H), jnp.float32)
    d_out = jax.random.normal(k2, (B, Td, H), jnp.float32)

    encoder_input = jax.random.randint(k3, (B, Te), 0, V, dtype=jnp.int32)
    decoder_input = jax.random.randint(k4, (B, Td), 0, V, dtype=jnp.int32)
    dec_emb = params["emb_table"][decoder_input]        # bart.shared(decoder_input)

    enc_mask = jnp.ones((B, Te), jnp.float32).at[1, -3:].set(0.0)
    decoder_output = jax.random.randint(k5, (B, Td), 0, V, dtype=jnp.int32)
    decoder_output = decoder_output.at[1, -1].set(-1)   # exercise ignore_index=-1

    # bf16 activations/weights feed the MXU at full rate.
    bf16 = jnp.bfloat16
    e_bf, d_bf, emb_bf = e_out.astype(bf16), d_out.astype(bf16), dec_emb.astype(bf16)
    params_bf = {k: v.astype(bf16) for k, v in params.items()}

    loss = pgn_pallas_loss(e_bf, d_bf, emb_bf, enc_mask, encoder_input,
                           decoder_output, params_bf,
                           ts=TS, tq=TQ, tile_v=TILE_V, row_chunk=ROW_CHUNK)
    loss = jax.block_until_ready(loss)

    ref = pgn_ref_loss(e_bf, d_bf, emb_bf, enc_mask, encoder_input,
                       decoder_output, params_bf)
    assert jnp.allclose(loss, ref, rtol=2e-2, atol=2e-2), (loss, ref)

    print("KERNEL_OK")
</pallas_src>

<mosaic_0001>
module attributes {stable_mosaic.version = 11 : i64} {
  func.func @_setup_kernel(%arg0: i32, %arg1: i32, %arg2: memref<1x16x32xf32, #tpu.memory_space<vmem>>, %arg3: memref<1x16x32xbf16, #tpu.memory_space<vmem>>, %arg4: memref<1x8x32xbf16, #tpu.memory_space<vmem>>, %arg5: memref<1x8x32xbf16, #tpu.memory_space<vmem>>, %arg6: memref<1x1x16xf32, #tpu.memory_space<vmem>>, %arg7: memref<32x32xbf16, #tpu.memory_space<vmem>>, %arg8: memref<1x32xbf16, #tpu.memory_space<vmem>>, %arg9: memref<1x32xbf16, #tpu.memory_space<vmem>>, %arg10: memref<1x32xbf16, #tpu.memory_space<vmem>>, %arg11: memref<1x32xbf16, #tpu.memory_space<vmem>>, %arg12: memref<1x32xbf16, #tpu.memory_space<vmem>>, %arg13: memref<1x1xbf16, #tpu.memory_space<vmem>>, %arg14: memref<32x32xbf16, #tpu.memory_space<vmem>>, %arg15: memref<32x32xbf16, #tpu.memory_space<vmem>>, %arg16: memref<1x32xbf16, #tpu.memory_space<vmem>>, %arg17: memref<1x8x32xbf16, #tpu.memory_space<vmem>>, %arg18: memref<1x8x16xbf16, #tpu.memory_space<vmem>>, %arg19: memref<1x8x1xf32, #tpu.memory_space<vmem>>, %arg20: memref<8x32xf32, #tpu.memory_space<vmem>>, %arg21: memref<8x16xf32, #tpu.memory_space<vmem>>) attributes {dimension_semantics = [#tpu.dimension_semantics<parallel>, #tpu.dimension_semantics<parallel>], iteration_bounds = array<i64: 2, 2>, scalar_prefetch = 0 : i64, scratch_operands = 2 : i64, tpu.core_type = #tpu.core_type<tc>, window_params = [{transform_indices = @transform_0, window_bounds = array<i64: 1, 16, 32>}, {transform_indices = @transform_1, window_bounds = array<i64: 1, 16, 32>}, {transform_indices = @transform_2, window_bounds = array<i64: 1, 8, 32>}, {transform_indices = @transform_3, window_bounds = array<i64: 1, 8, 32>}, {transform_indices = @transform_4, window_bounds = array<i64: 1, 1, 16>}, {pipeline_mode = #tpu.pipeline_mode<synchronous>, transform_indices = @transform_5, window_bounds = array<i64: 32, 32>}, {pipeline_mode = #tpu.pipeline_mode<synchronous>, transform_indices = @transform_6, window_bounds = array<i64: 1, 32>}, {pipeline_mode = #tpu.pipeline_mode<synchronous>, transform_indices = @transform_7, window_bounds = array<i64: 1, 32>}, {pipeline_mode = #tpu.pipeline_mode<synchronous>, transform_indices = @transform_8, window_bounds = array<i64: 1, 32>}, {pipeline_mode = #tpu.pipeline_mode<synchronous>, transform_indices = @transform_9, window_bounds = array<i64: 1, 32>}, {pipeline_mode = #tpu.pipeline_mode<synchronous>, transform_indices = @transform_10, window_bounds = array<i64: 1, 32>}, {pipeline_mode = #tpu.pipeline_mode<synchronous>, transform_indices = @transform_11, window_bounds = array<i64: 1, 1>}, {pipeline_mode = #tpu.pipeline_mode<synchronous>, transform_indices = @transform_12, window_bounds = array<i64: 32, 32>}, {pipeline_mode = #tpu.pipeline_mode<synchronous>, transform_indices = @transform_13, window_bounds = array<i64: 32, 32>}, {pipeline_mode = #tpu.pipeline_mode<synchronous>, transform_indices = @transform_14, window_bounds = array<i64: 1, 32>}, {transform_indices = @transform_15, window_bounds = array<i64: 1, 8, 32>}, {transform_indices = @transform_16, window_bounds = array<i64: 1, 8, 16>}, {transform_indices = @transform_17, window_bounds = array<i64: 1, 8, 1>}]} {
    %c0 = arith.constant 0 : index
    %c0_0 = arith.constant 0 : index
    %c0_1 = arith.constant 0 : index
    %0 = vector.load %arg4[%c0, %c0_0, %c0_1] : memref<1x8x32xbf16, #tpu.memory_space<vmem>>, vector<1x8x32xbf16>
    %1 = vector.shape_cast %0 : vector<1x8x32xbf16> to vector<8x32xbf16>
    %c0_2 = arith.constant 0 : index
    %c0_3 = arith.constant 0 : index
    %c0_4 = arith.constant 0 : index
    %2 = vector.load %arg5[%c0_2, %c0_3, %c0_4] : memref<1x8x32xbf16, #tpu.memory_space<vmem>>, vector<1x8x32xbf16>
    %3 = vector.shape_cast %2 : vector<1x8x32xbf16> to vector<8x32xbf16>
    %c0_5 = arith.constant 0 : index
    %c0_6 = arith.constant 0 : index
    %c0_7 = arith.constant 0 : index
    %4 = vector.load %arg6[%c0_5, %c0_6, %c0_7] : memref<1x1x16xf32, #tpu.memory_space<vmem>>, vector<1x1x16xf32>
    %5 = vector.shape_cast %4 : vector<1x1x16xf32> to vector<1x16xf32>
    %c0_8 = arith.constant 0 : index
    %c0_9 = arith.constant 0 : index
    %6 = vector.load %arg9[%c0_8, %c0_9] : memref<1x32xbf16, #tpu.memory_space<vmem>>, vector<1x32xbf16>
    %7 = arith.extf %6 : vector<1x32xbf16> to vector<1x32xf32>
    %c0_10 = arith.constant 0 : index
    %c0_11 = arith.constant 0 : index
    %8 = vector.load %arg7[%c0_10, %c0_11] : memref<32x32xbf16, #tpu.memory_space<vmem>>, vector<32x32xbf16>
    %cst = arith.constant dense<0.000000e+00> : vector<8x32xf32>
    %9 = tpu.matmul %1, %8, %cst {dimension_numbers = #tpu.dot_dimension_numbers<[1], [0], [0], [1], [0, 0, 1, 1], [], []>} : vector<8x32xbf16>, vector<32x32xbf16>, vector<8x32xf32> -> vector<8x32xf32>
    %c0_12 = arith.constant 0 : index
    %c0_13 = arith.constant 0 : index
    %10 = vector.load %arg8[%c0_12, %c0_13] : memref<1x32xbf16, #tpu.memory_space<vmem>>, vector<1x32xbf16>
    %11 = arith.extf %10 : vector<1x32xbf16> to vector<1x32xf32>
    %12 = vector.broadcast %11 : vector<1x32xf32> to vector<8x32xf32>
    %13 = arith.addf %9, %12 : vector<8x32xf32>
    %c0_14 = arith.constant 0 : index
    %c0_15 = arith.constant 0 : index
    %14 = vector.load %arg20[%c0_14, %c0_15] : memref<8x32xf32, #tpu.memory_space<vmem>>, vector<8x32xf32>
    tpu.vector_store %arg20[%c0_14, %c0_15], %13 {strides = array<i32>} : memref<8x32xf32, #tpu.memory_space<vmem>>, vector<8x32xf32>,
    %c0_i32 = arith.constant 0 : i32
    %c2_i32 = arith.constant 2 : i32
    %15 = arith.addi %c0_i32, %c2_i32 : i32
    %c1_i32 = arith.constant 1 : i32
    scf.for %arg22 = %c0_i32 to %15 step %c1_i32  : i32 {
      %c4_i32 = arith.constant 4 : i32
      %90 = arith.muli %arg22, %c4_i32 : i32
      %91 = tpu.assume_multiple %90, 4 : i32
      %92 = arith.index_cast %91 : i32 to index
      %c0_56 = arith.constant 0 : index
      %93 = vector.load %arg20[%92, %c0_56] : memref<8x32xf32, #tpu.memory_space<vmem>>, vector<4x32xf32>
      %94 = vector.shape_cast %93 : vector<4x32xf32> to vector<4x1x32xf32>
      %c0_57 = arith.constant 0 : index
      %c0_58 = arith.constant 0 : index
      %c0_59 = arith.constant 0 : index
      %95 = vector.load %arg2[%c0_57, %c0_58, %c0_59] : memref<1x16x32xf32, #tpu.memory_space<vmem>>, vector<1x16x32xf32>
      %96 = vector.shape_cast %95 : vector<1x16x32xf32> to vector<16x32xf32>
      %97 = vector.shape_cast %96 : vector<16x32xf32> to vector<1x16x32xf32>
      %98 = vector.broadcast %94 : vector<4x1x32xf32> to vector<4x16x32xf32>
      %99 = vector.broadcast %97 : vector<1x16x32xf32> to vector<4x16x32xf32>
      %100 = arith.addf %98, %99 : vector<4x16x32xf32>
      %101 = math.tanh %100 : vector<4x16x32xf32>
      %102 = vector.shape_cast %7 : vector<1x32xf32> to vector<1x1x32xf32>
      %103 = vector.broadcast %102 : vector<1x1x32xf32> to vector<4x16x32xf32>
      %104 = arith.mulf %101, %103 : vector<4x16x32xf32>
      %cst_60 = arith.constant dense<0.000000e+00> : vector<4x16xf32>
      %105 = vector.multi_reduction <add>, %104, %cst_60 [2] : vector<4x16x32xf32> to vector<4x16xf32>
      %106 = arith.index_cast %91 : i32 to index
      %c0_61 = arith.constant 0 : index
      %107 = vector.load %arg21[%106, %c0_61] : memref<8x16xf32, #tpu.memory_space<vmem>>, vector<4x16xf32>
      tpu.vector_store %arg21[%106, %c0_61], %105 {strides = array<i32>} : memref<8x16xf32, #tpu.memory_space<vmem>>, vector<4x16xf32>,
    }
    %c2_i32_16 = arith.constant 2 : i32
    %c0_17 = arith.constant 0 : index
    %c0_18 = arith.constant 0 : index
    %16 = vector.load %arg21[%c0_17, %c0_18] : memref<8x16xf32, #tpu.memory_space<vmem>>, vector<8x16xf32>
    %cst_19 = arith.constant dense<0xFF800000> : vector<8xf32>
    %17 = vector.multi_reduction <maximumf>, %16, %cst_19 [1] : vector<8x16xf32> to vector<8xf32>
    %18 = vector.shape_cast %17 : vector<8xf32> to vector<8x1xf32>
    %19 = vector.broadcast %18 : vector<8x1xf32> to vector<8x16xf32>
    %20 = arith.subf %16, %19 : vector<8x16xf32>
    %21 = math.exp %20 : vector<8x16xf32>
    %cst_20 = arith.constant dense<0.000000e+00> : vector<8xf32>
    %22 = vector.multi_reduction <add>, %21, %cst_20 [1] : vector<8x16xf32> to vector<8xf32>
    %23 = vector.shape_cast %22 : vector<8xf32> to vector<8x1xf32>
    %24 = vector.broadcast %23 : vector<8x1xf32> to vector<8x16xf32>
    %25 = arith.divf %21, %24 : vector<8x16xf32>
    %26 = vector.broadcast %5 : vector<1x16xf32> to vector<8x16xf32>
    %27 = arith.mulf %25, %26 : vector<8x16xf32>
    %cst_21 = arith.constant dense<0.000000e+00> : vector<8xf32>
    %28 = vector.multi_reduction <add>, %27, %cst_21 [1] : vector<8x16xf32> to vector<8xf32>
    %29 = vector.shape_cast %28 : vector<8xf32> to vector<8x1xf32>
    %30 = vector.broadcast %29 : vector<8x1xf32> to vector<8x16xf32>
    %31 = arith.divf %27, %30 : vector<8x16xf32>
    %c0_22 = arith.constant 0 : index
    %c0_23 = arith.constant 0 : index
    %c0_24 = arith.constant 0 : index
    %32 = vector.load %arg3[%c0_22, %c0_23, %c0_24] : memref<1x16x32xbf16, #tpu.memory_space<vmem>>, vector<1x16x32xbf16>
    %33 = vector.shape_cast %32 : vector<1x16x32xbf16> to vector<16x32xbf16>
    %34 = arith.truncf %31 : vector<8x16xf32> to vector<8x16xbf16>
    %cst_25 = arith.constant dense<0.000000e+00> : vector<8x32xf32>
    %35 = tpu.matmul %34, %33, %cst_25 {dimension_numbers = #tpu.dot_dimension_numbers<[1], [0], [0], [1], [0, 0, 1, 1], [], []>} : vector<8x16xbf16>, vector<16x32xbf16>, vector<8x32xf32> -> vector<8x32xf32>
    %c0_26 = arith.constant 0 : index
    %c0_27 = arith.constant 0 : index
    %36 = vector.load %arg10[%c0_26, %c0_27] : memref<1x32xbf16, #tpu.memory_space<vmem>>, vector<1x32xbf16>
    %37 = arith.extf %36 : vector<1x32xbf16> to vector<1x32xf32>
    %38 = vector.broadcast %37 : vector<1x32xf32> to vector<8x32xf32>
    %39 = arith.mulf %35, %38 : vector<8x32xf32>
    %40 = arith.extf %1 : vector<8x32xbf16> to vector<8x32xf32>
    %c0_28 = arith.constant 0 : index
    %c0_29 = arith.constant 0 : index
    %41 = vector.load %arg11[%c0_28, %c0_29] : memref<1x32xbf16, #tpu.memory_space<vmem>>, vector<1x32xbf16>
    %42 = arith.extf %41 : vector<1x32xbf16> to vector<1x32xf32>
    %43 = vector.broadcast %42 : vector<1x32xf32> to vector<8x32xf32>
    %44 = arith.mulf %40, %43 : vector<8x32xf32>
    %45 = arith.addf %39, %44 : vector<8x32xf32>
    %46 = arith.extf %3 : vector<8x32xbf16> to vector<8x32xf32>
    %c0_30 = arith.constant 0 : index
    %c0_31 = arith.constant 0 : index
    %47 = vector.load %arg12[%c0_30, %c0_31] : memref<1x32xbf16, #tpu.memory_space<vmem>>, vector<1x32xbf16>
    %48 = arith.extf %47 : vector<1x32xbf16> to vector<1x32xf32>
    %49 = vector.broadcast %48 : vector<1x32xf32> to vector<8x32xf32>
    %50 = arith.mulf %46, %49 : vector<8x32xf32>
    %51 = arith.addf %45, %50 : vector<8x32xf32>
    %cst_32 = arith.constant dense<0.000000e+00> : vector<8xf32>
    %52 = vector.multi_reduction <add>, %51, %cst_32 [1] : vector<8x32xf32> to vector<8xf32>
    %53 = vector.shape_cast %52 : vector<8xf32> to vector<8x1xf32>
    %c0_33 = arith.constant 0 : index
    %c0_34 = arith.constant 0 : index
    %54 = vector.load %arg13[%c0_33, %c0_34] : memref<1x1xbf16, #tpu.memory_space<vmem>>, vector<1x1xbf16>
    %55 = arith.extf %54 : vector<1x1xbf16> to vector<1x1xf32>
    %56 = vector.broadcast %55 : vector<1x1xf32> to vector<8x1xf32>
    %57 = arith.addf %53, %56 : vector<8x1xf32>
    %cst_35 = arith.constant 5.000000e-01 : f32
    %58 = vector.broadcast %cst_35 : f32 to vector<8x1xf32>
    %59 = arith.mulf %58, %57 : vector<8x1xf32>
    %60 = math.tanh %59 : vector<8x1xf32>
    %cst_36 = arith.constant 5.000000e-01 : f32
    %61 = vector.broadcast %cst_36 : f32 to vector<8x1xf32>
    %62 = arith.mulf %61, %60 : vector<8x1xf32>
    %cst_37 = arith.constant 5.000000e-01 : f32
    %63 = vector.broadcast %cst_37 : f32 to vector<8x1xf32>
    %64 = arith.addf %62, %63 : vector<8x1xf32>
    %c0_38 = arith.constant 0 : index
    %c0_39 = arith.constant 0 : index
    %65 = vector.load %arg14[%c0_38, %c0_39] : memref<32x32xbf16, #tpu.memory_space<vmem>>, vector<32x32xbf16>
    %cst_40 = arith.constant dense<0.000000e+00> : vector<8x32xf32>
    %66 = tpu.matmul %1, %65, %cst_40 {dimension_numbers = #tpu.dot_dimension_numbers<[1], [0], [0], [1], [0, 0, 1, 1], [], []>} : vector<8x32xbf16>, vector<32x32xbf16>, vector<8x32xf32> -> vector<8x32xf32>
    %67 = arith.truncf %35 : vector<8x32xf32> to vector<8x32xbf16>
    %c0_41 = arith.constant 0 : index
    %c0_42 = arith.constant 0 : index
    %68 = vector.load %arg15[%c0_41, %c0_42] : memref<32x32xbf16, #tpu.memory_space<vmem>>, vector<32x32xbf16>
    %cst_43 = arith.constant dense<0.000000e+00> : vector<8x32xf32>
    %69 = tpu.matmul %67, %68, %cst_43 {dimension_numbers = #tpu.dot_dimension_numbers<[1], [0], [0], [1], [0, 0, 1, 1], [], []>} : vector<8x32xbf16>, vector<32x32xbf16>, vector<8x32xf32> -> vector<8x32xf32>
    %70 = arith.addf %66, %69 : vector<8x32xf32>
    %c0_44 = arith.constant 0 : index
    %c0_45 = arith.constant 0 : index
    %71 = vector.load %arg16[%c0_44, %c0_45] : memref<1x32xbf16, #tpu.memory_space<vmem>>, vector<1x32xbf16>
    %72 = arith.extf %71 : vector<1x32xbf16> to vector<1x32xf32>
    %73 = vector.broadcast %72 : vector<1x32xf32> to vector<8x32xf32>
    %74 = arith.addf %70, %73 : vector<8x32xf32>
    %75 = arith.truncf %74 : vector<8x32xf32> to vector<8x32xbf16>
    %c0_46 = arith.constant 0 : index
    %c0_47 = arith.constant 0 : index
    %c0_48 = arith.constant 0 : index
    %76 = vector.load %arg17[%c0_46, %c0_47, %c0_48] : memref<1x8x32xbf16, #tpu.memory_space<vmem>>, vector<1x8x32xbf16>
    %77 = vector.shape_cast %76 : vector<1x8x32xbf16> to vector<8x32xbf16>
    %78 = vector.shape_cast %75 : vector<8x32xbf16> to vector<1x8x32xbf16>
    tpu.vector_store %arg17[%c0_46, %c0_47, %c0_48], %78 {strides = array<i32>} : memref<1x8x32xbf16, #tpu.memory_space<vmem>>, vector<1x8x32xbf16>,
    %cst_49 = arith.constant 1.000000e+00 : f32
    %79 = vector.broadcast %cst_49 : f32 to vector<8x1xf32>
    %80 = arith.subf %79, %64 : vector<8x1xf32>
    %81 = vector.broadcast %80 : vector<8x1xf32> to vector<8x16xf32>
    %82 = arith.mulf %81, %31 : vector<8x16xf32>
    %83 = arith.truncf %82 : vector<8x16xf32> to vector<8x16xbf16>
    %c0_50 = arith.constant 0 : index
    %c0_51 = arith.constant 0 : index
    %c0_52 = arith.constant 0 : index
    %84 = vector.load %arg18[%c0_50, %c0_51, %c0_52] : memref<1x8x16xbf16, #tpu.memory_space<vmem>>, vector<1x8x16xbf16>
    %85 = vector.shape_cast %84 : vector<1x8x16xbf16> to vector<8x16xbf16>
    %86 = vector.shape_cast %83 : vector<8x16xbf16> to vector<1x8x16xbf16>
    tpu.vector_store %arg18[%c0_50, %c0_51, %c0_52], %86 {strides = array<i32>} : memref<1x8x16xbf16, #tpu.memory_space<vmem>>, vector<1x8x16xbf16>,
    %c0_53 = arith.constant 0 : index
    %c0_54 = arith.constant 0 : index
    %c0_55 = arith.constant 0 : index
    %87 = vector.load %arg19[%c0_53, %c0_54, %c0_55] : memref<1x8x1xf32, #tpu.memory_space<vmem>>, vector<1x8x1xf32>
    %88 = vector.shape_cast %87 : vector<1x8x1xf32> to vector<8x1xf32>
    %89 = vector.shape_cast %64 : vector<8x1xf32> to vector<1x8x1xf32>
    tpu.vector_store %arg19[%c0_53, %c0_54, %c0_55], %89 {strides = array<i32>} : memref<1x8x1xf32, #tpu.memory_space<vmem>>, vector<1x8x1xf32>,
    return
  }
  func.func @transform_0(%arg0: i32, %arg1: i32) -> (i32, i32, i32) {
    %c0_i32 = arith.constant 0 : i32
    %c0_i32_0 = arith.constant 0 : i32
    %c0_i32_1 = arith.constant 0 : i32
    return %arg0, %c0_i32, %c0_i32_0 : i32, i32, i32
  }
  func.func @transform_1(%arg0: i32, %arg1: i32) -> (i32, i32, i32) {
    %c0_i32 = arith.constant 0 : i32
    %c0_i32_0 = arith.constant 0 : i32
    %c0_i32_1 = arith.constant 0 : i32
    return %arg0, %c0_i32, %c0_i32_0 : i32, i32, i32
  }
  func.func @transform_2(%arg0: i32, %arg1: i32) -> (i32, i32, i32) {
    %c0_i32 = arith.constant 0 : i32
    %c0_i32_0 = arith.constant 0 : i32
    return %arg0, %arg1, %c0_i32 : i32, i32, i32
  }
  func.func @transform_3(%arg0: i32, %arg1: i32) -> (i32, i32, i32) {
    %c0_i32 = arith.constant 0 : i32
    %c0_i32_0 = arith.constant 0 : i32
    return %arg0, %arg1, %c0_i32 : i32, i32, i32
  }
  func.func @transform_4(%arg0: i32, %arg1: i32) -> (i32, i32, i32) {
    %c0_i32 = arith.constant 0 : i32
    %c0_i32_0 = arith.constant 0 : i32
    %c0_i32_1 = arith.constant 0 : i32
    return %arg0, %c0_i32, %c0_i32_0 : i32, i32, i32
  }
  func.func @transform_5(%arg0: i32, %arg1: i32) -> (i32, i32) {
    %c0_i32 = arith.constant 0 : i32
    %c0_i32_0 = arith.constant 0 : i32
    %c0_i32_1 = arith.constant 0 : i32
    return %c0_i32, %c0_i32_0 : i32, i32
  }
  func.func @transform_6(%arg0: i32, %arg1: i32) -> (i32, i32) {
    %c0_i32 = arith.constant 0 : i32
    %c0_i32_0 = arith.constant 0 : i32
    %c0_i32_1 = arith.constant 0 : i32
    return %c0_i32, %c0_i32_0 : i32, i32
  }
  func.func @transform_7(%arg0: i32, %arg1: i32) -> (i32, i32) {
    %c0_i32 = arith.constant 0 : i32
    %c0_i32_0 = arith.constant 0 : i32
    %c0_i32_1 = arith.constant 0 : i32
    return %c0_i32, %c0_i32_0 : i32, i32
  }
  func.func @transform_8(%arg0: i32, %arg1: i32) -> (i32, i32) {
    %c0_i32 = arith.constant 0 : i32
    %c0_i32_0 = arith.constant 0 : i32
    %c0_i32_1 = arith.constant 0 : i32
    return %c0_i32, %c0_i32_0 : i32, i32
  }
  func.func @transform_9(%arg0: i32, %arg1: i32) -> (i32, i32) {
    %c0_i32 = arith.constant 0 : i32
    %c0_i32_0 = arith.constant 0 : i32
    %c0_i32_1 = arith.constant 0 : i32
    return %c0_i32, %c0_i32_0 : i32, i32
  }
  func.func @transform_10(%arg0: i32, %arg1: i32) -> (i32, i32) {
    %c0_i32 = arith.constant 0 : i32
    %c0_i32_0 = arith.constant 0 : i32
    %c0_i32_1 = arith.constant 0 : i32
    return %c0_i32, %c0_i32_0 : i32, i32
  }
  func.func @transform_11(%arg0: i32, %arg1: i32) -> (i32, i32) {
    %c0_i32 = arith.constant 0 : i32
    %c0_i32_0 = arith.constant 0 : i32
    %c0_i32_1 = arith.constant 0 : i32
    return %c0_i32, %c0_i32_0 : i32, i32
  }
  func.func @transform_12(%arg0: i32, %arg1: i32) -> (i32, i32) {
    %c0_i32 = arith.constant 0 : i32
    %c0_i32_0 = arith.constant 0 : i32
    %c0_i32_1 = arith.constant 0 : i32
    return %c0_i32, %c0_i32_0 : i32, i32
  }
  func.func @transform_13(%arg0: i32, %arg1: i32) -> (i32, i32) {
    %c0_i32 = arith.constant 0 : i32
    %c0_i32_0 = arith.constant 0 : i32
    %c0_i32_1 = arith.constant 0 : i32
    return %c0_i32, %c0_i32_0 : i32, i32
  }
  func.func @transform_14(%arg0: i32, %arg1: i32) -> (i32, i32) {
    %c0_i32 = arith.constant 0 : i32
    %c0_i32_0 = arith.constant 0 : i32
    %c0_i32_1 = arith.constant 0 : i32
    return %c0_i32, %c0_i32_0 : i32, i32
  }
  func.func @transform_15(%arg0: i32, %arg1: i32) -> (i32, i32, i32) {
    %c0_i32 = arith.constant 0 : i32
    %c0_i32_0 = arith.constant 0 : i32
    return %arg0, %arg1, %c0_i32 : i32, i32, i32
  }
  func.func @transform_16(%arg0: i32, %arg1: i32) -> (i32, i32, i32) {
    %c0_i32 = arith.constant 0 : i32
    %c0_i32_0 = arith.constant 0 : i32
    return %arg0, %arg1, %c0_i32 : i32, i32, i32
  }
  func.func @transform_17(%arg0: i32, %arg1: i32) -> (i32, i32, i32) {
    %c0_i32 = arith.constant 0 : i32
    %c0_i32_0 = arith.constant 0 : i32
    return %arg0, %arg1, %c0_i32 : i32, i32, i32
  }
}

</mosaic_0001>

<bundles_post_ra>
// kernel: tpu_custom_call.1
= control target key start
LH: loop header
LB: loop body
LE: loop exit
PB: predicated region body
PF: predicated region fallthrough
CT: control target
= control target key end

     0   :  { %s2646_s0 = inlined_call_operand.hbm [shape: f32[2,16,32], index: 0, kind: input, shape index: {}]   ;;  %s2647_s1 = inlined_call_operand.hbm [shape: bf16[2,16,32], index: 1, kind: input, shape index: {}]   ;;  %s2648_s2 = inlined_call_operand.hbm [shape: bf16[2,16,32], index: 2, kind: input, shape index: {}]   ;;  %s2649_s3 = inlined_call_operand.hbm [shape: bf16[2,16,32], index: 3, kind: input, shape index: {}]   ;;  %s2650_s4 = inlined_call_operand.vmem [shape: f32[2,1,16], index: 4, kind: input, shape index: {}]   ;;  %s2651_s5 = inlined_call_operand.hbm [shape: bf16[32,32], index: 5, kind: input, shape index: {}]   ;;  %s2652_s6 = inlined_call_operand.vmem [shape: bf16[1,32], index: 6, kind: input, shape index: {}]   ;;  %s2653_s7 = inlined_call_operand.vmem [shape: bf16[1,32], index: 7, kind: input, shape index: {}]   ;;  %s2654_s8 = inlined_call_operand.vmem [shape: bf16[1,32], index: 8, kind: input, shape index: {}]   ;;  %s2655_s9 = inlined_call_operand.vmem [shape: bf16[1,32], index: 9, kind: input, shape index: {}]   ;;  %s2656_s10 = inlined_call_operand.vmem [shape: bf16[1,32], index: 10, kind: input, shape index: {}]   ;;  %s2657_s11 = inlined_call_operand.<no memory space> [shape: bf16[1,1], index: 11, kind: input, shape index: {}]   ;;  %s2658_s12 = inlined_call_operand.hbm [shape: bf16[32,32], index: 12, kind: input, shape index: {}]   ;;  %s2659_s13 = inlined_call_operand.hbm [shape: bf16[32,32], index: 13, kind: input, shape index: {}]   ;;  %s2660_s14 = inlined_call_operand.vmem [shape: bf16[1,32], index: 14, kind: input, shape index: {}]   ;;  %s2661_s15 = inlined_call_operand.hbm [shape: bf16[2,16,32], index: 15, kind: output, shape index: {0}]   ;;  %s2662_s16 = inlined_call_operand.hbm [shape: bf16[2,16,16], index: 16, kind: output, shape index: {1}]   ;;  %s2663_s17 = inlined_call_operand.vmem [shape: f32[2,16,1], index: 17, kind: output, shape index: {2}]  }
   0x1   :  { %2681 = sst [smem:[#allocation36_spill]] %s2646_s0  ;;  %v23_v0 = vstv %s2657_s11 }
   0x2   :  { %2682 = sst [smem:[#allocation37_spill]] %s2647_s1  ;;  %24 = vst [vmem:[#allocation4] sm:$0x1] %v23_v0 }
   0x3   :  { %2683 = sst [smem:[#allocation38_spill]] %s2648_s2 }
   0x4   :  { %2684 = sst [smem:[#allocation39_spill]] %s2649_s3 }
   0x5   :  { %2685 = sst [smem:[#allocation40_spill]] %s2650_s4 }
   0x6   :  { %2686 = sst [smem:[#allocation41_spill]] %s2651_s5 }
   0x7   :  { %2687 = sst [smem:[#allocation42_spill]] %s2652_s6 }
   0x8   :  { %2688 = sst [smem:[#allocation43_spill]] %s2653_s7 }
   0x9   :  { %2689 = sst [smem:[#allocation44_spill]] %s2654_s8 }
   0xa   :  { %2690 = sst [smem:[#allocation45_spill]] %s2655_s9 }
   0xb   :  { %2691 = sst [smem:[#allocation46_spill]] %s2656_s10 }
   0xc   :  { %2692 = sst [smem:[#allocation47_spill]] %s2658_s12 }
   0xd   :  { %2693 = sst [smem:[#allocation48_spill]] %s2659_s13 }
   0xe   :  { %2694 = sst [smem:[#allocation49_spill]] %s2660_s14 }
   0xf   :  { %2695 = sst [smem:[#allocation50_spill]] %s2661_s15 }
  0x10   :  { %2696 = sst [smem:[#allocation51_spill]] %s2662_s16 }
  0x11   :  { %2697 = sst [smem:[#allocation52_spill]] %s2663_s17 }
  0x12   :  { %25 = vsyncpa [#allocation6], 0 }
  0x13   :  { %27 = vsyncpa [#allocation6 + $0x1], 0 }
  0x14   :  { %28 = vsyncpa [#allocation9], 0 }
  0x15   :  { %30 = vsyncpa [#allocation9 + $0x1], 0 }
  0x16   :  { %31 = vsyncpa [#allocation12], 0 }
  0x17   :  { %33 = vsyncpa [#allocation12 + $0x1], 0 }
  0x18   :  { %34 = vsyncpa [#allocation15], 0 }
  0x19   :  { %35 = vsyncpa [#allocation7], 0 }
  0x1a   :  { %37 = vsyncpa [#allocation7 + $0x1], 0 }
  0x1b   :  { %38 = vsyncpa [#allocation19], 0 }
  0x1c   :  { %40 = vsyncpa [#allocation19 + $0x1], 0  ;;  %s2224_s26 = smov 0   ;;  %s2226_s27 = smov 0  }
  0x1d   :  { %s2228_s28 = smov 0   ;;  %s2230_s29 = smov 0  }
  0x1e   :  { %s2232_s11 = smov 0   ;;  %s2234_s0 = smov 0  }
  0x1f   :  { %s2236_s30 = smov 0   ;;  %s2238_s18 = smov 0  }
  0x20   :  { %s2240_s19 = smov 0   ;;  %s2242_s1 = smov 0  }
  0x21   :  { %s2244_s20 = smov 0  }
  0x22 LB: > { %2698 = sst [smem:[#allocation28_spill]] %s2077_s26  ;;  %s2280_s21 = sadd.s32 4294967295, %s2117_s20   ;;  %s2117_s20 = sphi %s2244_s20, %s46_s20   ;;  %s2113_s1 = sphi %s2242_s1, %s2755_s1   ;;  %s2109_s19 = sphi %s2240_s19, %s2754_s19   ;;  %s2105_s18 = sphi %s2238_s18, %s2753_s18   ;;  %s2101_s30 = sphi %s2236_s30, %s2752_s30   ;;  %s2097_s0 = sphi %s2234_s0, %s2751_s0   ;;  %s2093_s11 = sphi %s2232_s11, %s2750_s11   ;;  %s2089_s29 = sphi %s2230_s29, %s2749_s29   ;;  %s2085_s28 = sphi %s2228_s28, %s2748_s28   ;;  %s2081_s27 = sphi %s2226_s27, %s2747_s27   ;;  %s2077_s26 = sphi %s2224_s26, %s2746_s26  }
  0x23   : > { %2699 = sst [smem:[#allocation29_spill]] %s2101_s30  ;;  %p1458_p0 = scmp.ge.s32.totalorder %s2117_s20, 1 }
  0x24   : > { %2700 = sst [smem:[#allocation30_spill]] %s2105_s18  ;;  %p79_p1 = scmp.eq.s32.totalorder %s2280_s21, 0 }
  0x25   : > { %p491_p2 = scmp.lt.s32.totalorder %s2117_s20, 5  ;;  %s2701_s5 = sld [smem:[#allocation41_spill]] }
  0x26   : > { %s2123_s16 = smov [#allocation13]   ;;  %s2704_s12 = sld [smem:[#allocation47_spill]] }
  0x27   : > { %p2288_p3 = pnand %p1458_p0, %p491_p2  ;;  %s504_s15 = sshll.u32 %s2123_s16, 4  ;;  %s505_s15 = int_to_ptr.vmem [resolvable:$true] %s504_s15 }
  0x28   : > { %s2666_s10 = smov 64   ;;  %s2668_s16 = smov 4  }
  0x29   : > { %p1561_p4 = pneg %p2288_p3  ;;  %s2126_s8 = smov [#allocation14]  }
  0x2a   : > { %s536_s9 = sshll.u32 %s2126_s8, 4  ;;  %p72_p6 = scmp.ne.s32.totalorder %s2097_s0, %s2093_s11  ;;  %s537_s9 = int_to_ptr.vmem [resolvable:$true] %s536_s9 }
  0x2b   : > { %s502_s24 = sshll.u32 %s2701_s5, 4  ;;  %p2296_p5 = pnand %p1561_p4, %p79_p1  ;;  %s503_s24 = int_to_ptr.hbm [resolvable:$true] %s502_s24 }
  0x2c   : > { %s534_s14 = sshll.u32 %s2704_s12, 4  ;;  %p73_p7 = scmp.eq.s32.totalorder %s2117_s20, 0  ;;  %s535_s14 = int_to_ptr.hbm [resolvable:$true] %s534_s14 }
  0x2d   : > { %1564 = dma.hbm_to_vmem [thread:$0]  (!%p2296_p5), %s503_s24, 256, %s505_s15, [#allocation12], %s2666_s10, %s2666_s10, %s2668_s16  }
  0x2e   : > { %1567 = dma.hbm_to_vmem [thread:$0]  (!%p2296_p5), %s535_s14, 256, %s537_s9, [#allocation15], %s2666_s10, %s2666_s10, %s2668_s16  }
  0x2f   : > { %p78_p8 = scmp.ne.s32.totalorder %s2093_s11, %s2089_s29  ;;  %p1594_p9 = scmp.lt.s32.totalorder %s2117_s20, 4 }
  0x30   : > { %s2321_s23 = sand.u32 1, %s2097_s0   ;;  %p74_p10 = por %p73_p7, %p72_p6 }
  0x31   : > { %p2327_p11 = por %p79_p1, %p78_p8  ;;  %s2674_s15 = sand.u32 1, %s2117_s20  }
  0x32   : > { %s1466_s24 = sshll.u32 %s2321_s23, 3  ;;  %p2335_p12 = pnand %p1594_p9, %p74_p10 }
  0x33   : > { %s2705_s8 = scalar_select %p2327_p11, 1, 0 }
  0x34   : > { %s1529_s14 = sshll.u32 %s2113_s1, 3  ;;  %s2708_s10 = sld [smem:[#allocation37_spill]] }
  0x35   : > { %2706 = sst [smem:[#allocation31_spill]] %s2705_s8  ;;  %s593_s6 = scalar_lea.vmem [#allocation8], %s1466_s24 }
  0x36   : > { %s601_s7 = sshll.u32 %s593_s6, 4  ;;  %s2345_s17 = scalar_lea.sflag [#allocation9], %s2674_s15  ;;  %s602_s7 = int_to_ptr.vmem [resolvable:$true] %s601_s7 }
  0x37   : > { %s2709_s4 = smov 4   ;;  %s2710_s30 = smov 64  }
  0x38   : > { %s2711_s13 = sld [smem:[#allocation48_spill]]  ;;  %s2129_s22 = smov 8  }
  0x39   : > { %s2712_s18 = sld [smem:[#allocation36_spill]]  ;;  %p126_p0 = scmp.ne.s32.totalorder %s2085_s28, %s2081_s27 }
  0x3a   : > { %s598_s16 = scalar_lea.hbm %s2708_s10, %s1529_s14  ;;  %s2127_s10 = smov [#allocation16]  }
  0x3b   : > { %s599_s12 = sshll.u32 %s598_s16, 4  ;;  %s550_s6 = sshll.u32 %s2127_s10, 4  ;;  %s600_s12 = int_to_ptr.hbm [resolvable:$true] %s599_s12  ;;  %s551_s6 = int_to_ptr.vmem [resolvable:$true] %s550_s6 }
  0x3c   : > { %1577 = dma.hbm_to_vmem [thread:$0]  (!%p2335_p12), %s600_s12, 128, %s602_s7, %s2345_s17, %s2710_s30, %s2710_s30, %s2709_s4  }
  0x3d   : > { %s1463_s16 = sshll.u32 %s2321_s23, 4  ;;  %s1528_s7 = sshll.u32 %s2113_s1, 4 }
  0x3e   : > { %s548_s5 = sshll.u32 %s2711_s13, 4  ;;  %s571_s29 = scalar_lea.vmem [#allocation5], %s1463_s16  ;;  %s549_s5 = int_to_ptr.hbm [resolvable:$true] %s548_s5 }
  0x3f   : > { %1570 = dma.hbm_to_vmem [thread:$0]  (!%p2296_p5), %s549_s5, 256, %s551_s6, [#allocation15], %s2710_s30, %s2710_s30, %s2709_s4  }
  0x40   : > { %s576_s8 = scalar_lea.hbm %s2712_s18, %s1528_s7  ;;  %s579_s10 = sshll.u32 %s571_s29, 4  ;;  %s580_s10 = int_to_ptr.vmem [resolvable:$true] %s579_s10 }
  0x41   : > { %s577_s14 = sshll.u32 %s576_s8, 4  ;;  %s568_s4 = scalar_lea.sflag [#allocation6], %s2321_s23  ;;  %s578_s14 = int_to_ptr.hbm [resolvable:$true] %s577_s14 }
  0x42   : > { %s2128_s30 = smov 128   ;;  %s1457_s5 = sadd.s32 4294967294, %s2117_s20  }
  0x43   : > { %1574 = dma.hbm_to_vmem [thread:$0]  (!%p2335_p12), %s578_s14, 256, %s580_s10, %s568_s4, %s2128_s30, %s2128_s30, %s2129_s22  }
  0x44   : > { %s55_s6 = sadd.s32 1, %s2109_s19  ;;  %s58_s7 = sadd.s32 1, %s2113_s1 }
  0x45   : > { %p56_p13 = scmp.ge.s32.totalorder %s55_s6, 2  ;;  %s119_s16 = sadd.s32 1, %s2085_s28 }
  0x46   : > { %p2382_p2 = por %p126_p0, %p73_p7  ;;  %p132_p5 = scmp.ne.s32.totalorder %s2081_s27, %s2077_s26 }
  0x47   : > { %s2757_s6 = smov (%p56_p13, %s55_s6), 0  ;;  %s2759_s7 = smov (!%p56_p13, %s58_s7), %s2113_s1 }
  0x48   : > { %2713 = sst [smem:[#allocation32_spill]] %s2757_s6  ;;  %s115_s23 = ssub.s32 %s2109_s19, %s2757_s6 }
  0x49   : > { %p60_p4 = scmp.ge.s32.totalorder %s2759_s7, 2  ;;  %p422_p6 = scmp.eq.s32.totalorder %s2280_s21, 3 }
  0x4a   : > { %p428_p8 = scmp.eq.s32.totalorder %s1457_s5, 3  ;;  %p2393_p10 = por %p132_p5, %p79_p1 }
  0x4b   : > { %s2761_s7 = smov (%p60_p4, %s2759_s7), 0  ;;  %p2397_p12 = por %p422_p6, %p126_p0 }
  0x4c   : > { %2715 = sst [smem:[#allocation33_spill]] %s2761_s7  ;;  %s62_s18 = ssub.s32 %s2113_s1, %s2761_s7 }
  0x4d   : > { %s2717_s24 = scalar_select %p2397_p12, 1, 0 }
  0x4e   : > { %p2403_p7 = por %p428_p8, %p132_p5  ;;  %p63_p13 = scmp.eq.s32.totalorder %s62_s18, 0 }
  0x4f   : > { %2718 = sst [smem:[#allocation34_spill]] %s2717_s24  ;;  %s116_s14 = sor.u32 %s115_s23, %s62_s18 }
  0x50   : > { %s2719_s8 = scalar_select %p2403_p7, 1, 0 }
  0x51   : > { %p117_p4 = scmp.eq.s32.totalorder %s116_s14, 0  ;;  %s613_s29 = sand.u32 1, %s2085_s28  }
  0x52   : > { %2720 = sst [smem:[#allocation35_spill]] %s2719_s8  ;;  %s2721_s10 = sadd.s32 1, %s2097_s0 }
  0x53   : > { %s2411_s4 = scalar_select %p63_p13, %s2097_s0, %s2721_s10  }
  0x54   : > { %s2414_s30 = scalar_select %p117_p4, %s2085_s28, %s119_s16  }
  0x55   : > { %s1469_s22 = sshll.u32 %s613_s29, 2  ;;  %s1470_s5 = sshll.u32 %s2113_s1, 1 }
  0x56   : > { %s619_s15 = sadd.s32 %s2109_s19, %s1470_s5  ;;  %s615_s7 = scalar_lea.vmem [#allocation10], %s1469_s22 }
  0x57   : > { %s1471_s13 = sshll.u32 %s619_s15, 2  ;;  %s625_s6 = sshll.u32 %s615_s7, 4  ;;  %s626_s6 = int_to_ptr.vmem [resolvable:$true] %s625_s6 }
  0x58   : > { %s2722_s2 = sld [smem:[#allocation38_spill]]  ;;  %p1578_p0 = pnand %p1594_p9, %p2382_p2 }
  0x59   : > { %s2723_s3 = sld [smem:[#allocation39_spill]]  ;;  %s636_s29 = scalar_lea.vmem [#allocation11], %s1469_s22 }
  0x5a   : > { %s646_s10 = sshll.u32 %s636_s29, 4  ;;  %s2724_s7 = sand.u32 1, %s2117_s20   ;;  %s647_s10 = int_to_ptr.vmem [resolvable:$true] %s646_s10 }
  0x5b   : > { %s633_s5 = scalar_lea.sflag [#allocation12], %s2724_s7  ;;  %s663_s9 = sand.u32 (!%p2288_p3), 1, %s2093_s11  }
  0x5e   : > { %s621_s24 = scalar_lea.hbm %s2722_s2, %s1471_s13  ;;  %661 = sbr.rel (%p2288_p3) target bundleno = 1188 (0x4a4), region = 80 }
  0x5f   : > { %s623_s23 = sshll.u32 %s621_s24, 4  ;;  %s642_s14 = scalar_lea.hbm %s2723_s3, %s1471_s13  ;;  %s624_s23 = int_to_ptr.hbm [resolvable:$true] %s623_s23 }
  0x60   : > { %1580 = dma.hbm_to_vmem [thread:$0]  (!%p1578_p0), %s624_s23, 64, %s626_s6, %s2345_s17  }
  0x61   : > { %s644_s15 = sshll.u32 %s642_s14, 4  ;;  %s1476_s24 = sshll.u32 (!%p2288_p3), %s663_s9, 4  ;;  %s645_s15 = int_to_ptr.hbm [resolvable:$true] %s644_s15 }
  0x62   : > { %1583 = dma.hbm_to_vmem [thread:$0]  (!%p1578_p0), %s645_s15, 64, %s647_s10, %s633_s5  }
  0x63   : > { %s664_s17 = scalar_lea.sflag [#allocation6], %s663_s9  ;;  %s2434_s6 = scalar_lea.vmem [#allocation5], %s1476_s24 }
  0x64   : > { %2044 = dma.done.wait (%p2327_p11), %s664_s17, 256  }
  0x65   : > { %2046 = vsyncadd (%p2327_p11), %s664_s17, 4294967040  ;;  %s673_s13 = sand.u32 1, %s2280_s21   ;;  %s1477_s8 = sshll.u32 %s663_s9, 3 }
  0x66   : > { %s674_s22 = scalar_lea.sflag [#allocation9], %s673_s13  ;;  %s2441_s23 = scalar_lea.vmem [#allocation8], %s1477_s8 }
  0x67   : > { %2048 = dma.done.wait (%p2327_p11), %s674_s22, 128  }
  0x68   : > { %2050 = vsyncadd (%p2327_p11), %s674_s22, 4294967168  ;;  %s2448_s25 = sand.u32 1, %s2081_s27  }
  0x69   : > { %s2451_s16 = sshll.u32 %s2448_s25, 2 }
  0x6a   : > { %s687_s18 = scalar_lea.vmem [#allocation10], %s2451_s16 }
  0x6b   : > { %2052 = dma.done.wait (%p2393_p10), %s674_s22, 64  }
  0x6c   : > { %2054 = vsyncadd (%p2393_p10), %s674_s22, 4294967232  ;;  %s694_s14 = scalar_lea.sflag [#allocation12], %s673_s13  ;;  %s697_s29 = scalar_lea.vmem [#allocation11], %s2451_s16 }
  0x6d   : > { %2056 = dma.done.wait (%p2393_p10), %s694_s14, 64  }
  0x6e   : > { %2058 = vsyncadd (%p2393_p10), %s694_s14, 4294967232 }
  0x6f   : > { %2060 = dma.done.wait (%p79_p1), [#allocation12], 256  }
  0x70   : > { %2062 = vsyncadd (%p79_p1), [#allocation12], 4294967040 }
  0x71   : > { %2064 = dma.done.wait (%p79_p1), [#allocation15], 512  }
  0x72   : > { %2066 = vsyncadd (%p79_p1), [#allocation15], 4294966784  ;;  %s2726_s10 = sld [smem:[#allocation30_spill]]  ;;  %v2483_v1 = vld [vmem:[%s697_s29] sm:$0xf]  ;;  %v1531_v5 = vld [vmem:[#allocation13 + $0x8] sm:$0xff] }
  0x73   : > { %s2727_s15 = sld [smem:[#allocation29_spill]]  ;;  %841 = vmatpush.bf16.msra.mxu0 %v1531_v5  ;;  %v1530_v6 = vld [vmem:[#allocation13] sm:$0xff]  ;;  %v2493_v7 = vld [vmem:[%s687_s18] sm:$0xf]  ;;  %vm831_vm0 = vcmask 261120   ;;  %s777_s2 = scalar_lea.vmem [#allocation17], %s2451_s16 }
  0x74   : > { %s2728_s5 = sld [smem:[#allocation40_spill]]  ;;  %s2503_s12 = smov 0  }
  0x75   : > { %s2729_s22 = sld [smem:[#allocation52_spill]] }
  0x76   : > { %s2730_s3 = sld [smem:[#allocation43_spill]] }
  0x77   : > { %842 = vmatpush.bf16.msra.mxu0 %v1530_v6 }
  0x78   : > { %p795_p3 = scmp.lt.s32.totalorder %s2726_s10, 1 }
  0x79   : > { %p800_p9 = scmp.lt.s32.totalorder %s2727_s15, 1 }
  0x7a   : > { %s2763_s10 = smov (!%p795_p3, %s2726_s10), 1  ;;  %1495 = vmatmul.msk.bf16.vlgmr.msra.gmra.mxu0 %vm831_vm0, %v2493_v7 }
  0x7b   : > { %s2765_s15 = smov (!%p800_p9, %s2727_s15), 1  ;;  %s797_s26 = scalar_lea.vmem %s2728_s5, %s2763_s10 }
  0x7c   : > { %s1485_s9 = sshll.u32 %s2763_s10, 1  ;;  %v2485_v2 = vld [vmem:[%s797_s26] sm:$0x1] }
  0x7d   : > { %s803_s24 = sadd.s32 %s1485_s9, %s2765_s15  ;;  %v2490_v3 = vld [vmem:[%s2730_s3] sm:$0x1]  ;;  %s2731_s15 = sld [smem:[#allocation42_spill]] }
  0x7e   : > { %s1486_s17 = sshll.u32 %s803_s24, 3  ;;  %v811_v4 = vunpack.c.l.bf16 %v2490_v3  ;;  %s784_s3 = scalar_lea.vmem [#allocation18], %s2451_s16 }
  0x7f   : > { %s2481_s21 = scalar_lea.vmem %s2729_s22, %s1486_s17 }
  0x83   : > { %v816_v8 = vld [vmem:[%s2731_s15] sm:$0x1] }
  0x84   : > { %v817_v9 = vunpack.c.l.bf16 %v816_v8 }
  0x86   : > { %v818_v10 = vperm.slane %v817_v9, 0 }
  0xf7   : > { %v844_v11 = vpop.f32.mrf.mxu0 }
  0xf8   : > { %v845_v12 = vadd.f32 %v844_v11, %v818_v10 }
  0xfa   : > { %848 = vst.msk [vmem:[#allocation2] sm:$0xff] %vm831_vm0, %v845_v12 }
  0xff   : > { %v846_v13 = vpop.f32.mrf.mxu0 }
 0x100 LB: >> { %s1496_s18 = sshll.u32 %s2121_s12, 2  ;;  %v862_v15 = vld [vmem:[%s2434_s6] sm:$0xff]  ;;  %v863_v16 = vld [vmem:[%s2434_s6 + $0x8] sm:$0xff]  ;;  %v888_v30 = vperm.slane %v811_v4, 0  ;;  %v929_v60 = vlaneseq  ;;  %vm934_vm1 = vcmask 130112   ;;  %vm945_vm2 = vcmask 1041409   ;;  %s2121_s12 = sphi %s2503_s12, %s854_s12  }
 0x101   : >> { %s856_s7 = scalar_lea.vmem [#allocation2], %s1496_s18  ;;  %vm947_vm3 = vcmask 1042434   ;;  %vm949_vm4 = vcmask 1043459   ;;  %vm953_vm5 = vcmask 125952   ;;  %s952_s5 = scalar_lea.vmem [#allocation3], %s1496_s18 }
 0x102   : >> { %v857_v14 = vld [vmem:[%s856_s7] sm:$0xf]  ;;  %v930_v61 = vand.u32 127, %v929_v60  ;;  %s854_s12 = sadd.s32 1, %s2121_s12  }
 0x103   : >> { %v864_v17 = vperm.slane %v857_v14, 0  ;;  %v860_v18 = vrot.slane %v857_v14, 2  ;;  %v859_v19 = vrot.slane %v857_v14, 1  ;;  %v861_v20 = vrot.slane %v857_v14, 3  ;;  %p851_p1 = scmp.ge.s32.totalorder %s854_s12, 2  }
 0x104   : >> { %v932_v63 = vadd.s32 4294967288, %v930_v61  ;;  %vm956_vm6 = vcmask (%p851_p1), 130048   ;;  %v1533_v60 = vld [vmem:[#allocation14] sm:$0xff] (%p851_p1)  ;;  %s2732_s26 = sld [smem:[#allocation45_spill]] (%p851_p1)  ;;  %vm1134_vm15 = vcmask (%p851_p1), 7168  }
 0x105   : >> { %v872_v21 = vadd.f32 %v864_v17, %v862_v15  ;;  %v866_v22 = vperm.slane %v860_v18, 0  ;;  %v865_v23 = vperm.slane %v859_v19, 0  ;;  %v873_v24 = vadd.f32 %v864_v17, %v863_v16  ;;  %s2733_s17 = sld [smem:[#allocation44_spill]] (%p851_p1) }
 0x106   : >> { %v867_v29 = vperm.slane %v861_v20, 0  ;;  %s2734_s22 = sld [smem:[#allocation46_spill]] (%p851_p1) }
 0x107   : >> { %1703 = vtanh.f32 %v872_v21  ;;  %v876_v25 = vadd.f32 %v866_v22, %v862_v15  ;;  %v874_v26 = vadd.f32 %v865_v23, %v862_v15  ;;  %v877_v27 = vadd.f32 %v866_v22, %v863_v16  ;;  %s2735_s14 = sld [smem:[#allocation30_spill]] (%p851_p1) }
 0x108   : >> { %1705 = vtanh.f32 %v873_v24  ;;  %v875_v28 = vadd.f32 %v865_v23, %v863_v16  ;;  %v878_v32 = vadd.f32 %v867_v29, %v862_v15  ;;  %v879_v39 = vadd.f32 %v867_v29, %v863_v16  ;;  %s2736_s29 = sld [smem:[#allocation29_spill]] (%p851_p1) }
 0x109   : >> { %1707 = vtanh.f32 %v876_v25  ;;  %s2737_s18 = sld [smem:[#allocation49_spill]] (%p851_p1) }
 0x10a   : >> { %1709 = vtanh.f32 %v874_v26 }
 0x10b   : >> { %1711 = vtanh.f32 %v877_v27 }
 0x10c   : >> { %1713 = vtanh.f32 %v875_v28 }
 0x10d   : >> { %v1704_v31 = vpop.eup %1703  ;;  %1715 = vtanh.f32 %v878_v32  ;;  %s1522_s10 = sshll.u32 (%p851_p1), %s2735_s14, 1 }
 0x10e   : >> { %v1706_v33 = vpop.eup %1705  ;;  %v889_v34 = vmul.f32 %v1704_v31, %v888_v30  ;;  %1717 = vtanh.f32 %v879_v39  ;;  %v982_v39 = vperm.slane (%p851_p1), %v2485_v2, 0  ;;  %s2563_s7 = sadd.s32 (%p851_p1), %s2736_s29, %s1522_s10 }
 0x10f   : >> { %v1708_v35 = vpop.eup %1707  ;;  %v890_v44 = vmul.f32 %v1706_v33, %v888_v30 }
 0x110   : >> { %v1710_v36 = vpop.eup %1709  ;;  %v897_v37 = vsel %vm831_vm0, %v889_v34, 0.0  ;;  %v893_v38 = vmul.f32 %v1708_v35, %v888_v30 }
 0x111   : >> { %v1712_v40 = vpop.eup %1711  ;;  %898 = vadd.xlane.f32.xlu0 %v897_v37  ;;  %v891_v41 = vmul.f32 %v1710_v36, %v888_v30  ;;  %v900_v48 = vsel %vm831_vm0, %v890_v44, 0.0  ;;  %v1532_v44 = vld [vmem:[%s2441_s23] sm:$0xff] (%p851_p1) }
 0x112   : >> { %v1714_v42 = vpop.eup %1713  ;;  %v909_v43 = vsel %vm831_vm0, %v893_v38, 0.0  ;;  %v894_v46 = vmul.f32 %v1712_v40, %v888_v30  ;;  %1022 = vmatpush.bf16.msra.mxu1 (%p851_p1), %v1532_v44 }
 0x113   : >> { %910 = vadd.xlane.f32.xlu2 %v909_v43  ;;  %v903_v45 = vsel %vm831_vm0, %v891_v41, 0.0  ;;  %v892_v47 = vmul.f32 %v1714_v42, %v888_v30  ;;  %v1716_v49 = vpop.eup %1715 }
 0x114   : >> { %904 = vadd.xlane.f32.xlu1 %v903_v45  ;;  %v912_v50 = vsel %vm831_vm0, %v894_v46, 0.0  ;;  %v1718_v52 = vpop.eup %1717  ;;  %v895_v53 = vmul.f32 %v1716_v49, %v888_v30  ;;  %v1536_v45 = vld [vmem:[#allocation16 + $0x8] sm:$0xff] (%p851_p1)  ;;  %v1534_v46 = vld [vmem:[#allocation14 + $0x8] sm:$0xff] (%p851_p1) }
 0x115   : >> { %v906_v51 = vsel %vm831_vm0, %v892_v47, 0.0  ;;  %v896_v54 = vmul.f32 %v1718_v52, %v888_v30  ;;  %1085 = vmatpush.bf16.msra.mxu2 (%p851_p1), %v1536_v45  ;;  %1110 = vmatpush.bf16.msra.mxu3 (%p851_p1), %v1534_v46 }
 0x116   : >> { %v915_v55 = vsel %vm831_vm0, %v895_v53, 0.0 }
 0x117   : >> { %v918_v56 = vsel %vm831_vm0, %v896_v54, 0.0 }
 0x119   : >> { %901 = vadd.xlane.f32.xlu0 %v900_v48  ;;  %1111 = vmatpush.bf16.msra.mxu3 (%p851_p1), %v1533_v60 }
 0x11b   : >> { %913 = vadd.xlane.f32.xlu2 %v912_v50 }
 0x11c   : >> { %907 = vadd.xlane.f32.xlu1 %v906_v51  ;;  %1519 = vmatmul.msk.bf16.vlgmr.msra.gmra.mxu3 (%p851_p1), %vm831_vm0, %v2493_v7 }
 0x121   : >> { %916 = vadd.xlane.f32.xlu0 %v915_v55 }
 0x124   : >> { %919 = vadd.xlane.f32.xlu1 %v918_v56 }
 0x184   : >> { %v899_v57 = vpop.xlane.xlu0 %898 }
 0x185   : >> { %v931_v12 = vperm.slane %v899_v57, %v930_v61 }
 0x186   : >> { %v911_v58 = vpop.xlane.xlu2 %910 }
 0x187   : >> { %v905_v59 = vpop.xlane.xlu1 %904  ;;  %v939_v10 = vperm.slane %v911_v58, %v930_v61 }
 0x188   : >> { %v936_v8 = vperm.slane %v905_v59, %v930_v61  ;;  %v1535_v59 = vld [vmem:[#allocation16] sm:$0xff] (%p851_p1) }
 0x189   : > { %1086 = vmatpush.bf16.msra.mxu2 (%p851_p1), %v1535_v59 }
 0x18c   : >> { %v902_v62 = vpop.xlane.xlu0 %901 }
 0x18d   : >> { %v933_v9 = vperm.slane %v902_v62, %v932_v63  ;;  %v1028_v62 = vld [vmem:[%s2733_s17] sm:$0x1] (%p851_p1)  ;;  %s1164_s17 = sshll.u32 (%p851_p1), %s777_s2, 4  ;;  %s1165_s17 = int_to_ptr.vmem [resolvable:$true] %s1164_s17 }
 0x18e   : >> { %v914_v5 = vpop.xlane.xlu2 %913 }
 0x18f   : >> { %v908_v0 = vpop.xlane.xlu1 %907  ;;  %v940_v11 = vperm.slane %v914_v5, %v932_v63  ;;  %v935_v15 = vsel %vm934_vm1, %v933_v9, %v931_v12  ;;  %v1029_v5 = vunpack.c.l.bf16 (%p851_p1), %v1028_v62 }
 0x190   : >> { %v937_v6 = vperm.slane %v908_v0, %v932_v63 }
 0x191   : >> { %v941_v17 = vsel %vm934_vm1, %v940_v11, %v939_v10  ;;  %v1030_v10 = vperm.slane (%p851_p1), %v1029_v5, 0  ;;  %v1038_v11 = vunpack.c.l.bf16 (%p851_p1), %v2483_v1 }
 0x192   : >> { %v938_v13 = vsel %vm934_vm1, %v937_v6, %v936_v8  ;;  %v1032_v8 = vunpack.c.l.bf16 (%p851_p1), %v2493_v7 }
 0x193   : >> { %v946_v18 = vsel %vm945_vm2, %v938_v13, %v935_v15 }
 0x194   : >> { %v917_v14 = vpop.xlane.xlu0 %916  ;;  %v948_v21 = vsel %vm947_vm3, %v941_v17, %v946_v18 }
 0x195   : >> { %v942_v16 = vperm.slane %v917_v14, %v930_v61  ;;  %v1033_v61 = vld [vmem:[%s2732_s26] sm:$0x1] (%p851_p1)  ;;  %s2738_s26 = sld [smem:[#allocation50_spill]] (%p851_p1) }
 0x196   : > { %v1034_v0 = vunpack.c.l.bf16 (%p851_p1), %v1033_v61 }
 0x197   : >> { %v920_v19 = vpop.xlane.xlu1 %919 }
 0x198   : >> { %v943_v20 = vperm.slane %v920_v19, %v932_v63  ;;  %853 = sbr.rel (!%p851_p1) target bundleno = 256 (0x100), region = 215  ;;  %v1039_v63 = vld [vmem:[%s2734_s22] sm:$0x1] (%p851_p1)  ;;  %v1035_v9 = vperm.slane (%p851_p1), %v1034_v0, 0  ;;  %s1137_s22 = scalar_lea.sflag (%p851_p1), [#allocation7], %s2448_s25 }
 0x199   : > { %v1040_v6 = vunpack.c.l.bf16 (%p851_p1), %v1039_v63 }
 0x19a   : >> { %v944_v22 = vsel %vm934_vm1, %v943_v20, %v942_v16  ;;  %v1036_v13 = vmul.f32 (%p851_p1), %v1035_v9, %v1032_v8 }
 0x19b   : >> { %v950_v23 = vsel %vm949_vm4, %v944_v22, %v948_v21  ;;  %v1041_v12 = vperm.slane (%p851_p1), %v1040_v6, 0  ;;  %v2130_v22 = vmov (%p851_p1), 0   ;;  %s2739_s9 = smov (%p851_p1), %s2738_s26 }
 0x19c   : >> { %954 = vst.msk [vmem:[%s952_s5] sm:$0xf] %vm953_vm5, %v950_v23  ;;  %1719 = vset.pattern.permute.xlu2 (%p851_p1), %v2130_v22  ;;  %1720 = vset.pattern.permute.xlu0 (%p851_p1), %v2130_v22  ;;  %v1047_v23 = vld [vmem:[#allocation4] sm:$0x1] (%p851_p1)  ;;  %s1523_s5 = sshll.u32 (%p851_p1), %s2563_s7, 2  ;;  %s1959_s12 = scalar_lea.hbm (%p851_p1), %s2739_s9, 16 }
 0x19d   : > { %v1042_v17 = vmul.f32 %v1041_v12, %v1038_v11  ;;  %s1162_s24 = scalar_lea.hbm %s2738_s26, %s1523_s5 }
 0x19e   : > { %s1166_s13 = sshll.u32 %s1162_s24, 4  ;;  %s1167_s13 = int_to_ptr.hbm [resolvable:$true] %s1166_s13 }
 0x19f   : > { %v1113_v21 = vpop.f32.mrf.mxu3  ;;  %s1953_s14 = sshra.s32 %s1167_s13, 4  ;;  %s1954_s14 = int_to_ptr.hbm [resolvable:$true] %s1953_s14 }
 0x1a0   : > { %s1955_s29 = scalar_lea.hbm %s1954_s14, 4  ;;  %p1960_p6 = scmp.lt.s32.totalorder %s1954_s14, %s2739_s9 }
 0x1a1   : > { %p1956_p11 = scmp.ne.s32.totalorder %s1954_s14, %s1955_s29  ;;  %p1961_p8 = scmp.lt.s32.totalorder %s1959_s12, %s1955_s29 }
 0x1a3   : > { %v955_v24 = vld [vmem:[#allocation3] sm:$0xff]  ;;  %p1957_p2 = pnand %p1956_p11, %p2397_p12  ;;  %p1962_p10 = por %p1961_p8, %p1960_p6 }
 0x1a4   : > { %v957_v25 = vsel %vm956_vm6, %v955_v24, -inf }
 0x1a5   : > { %958 = vmax.xlane.f32.xlu0 %v957_v25  ;;  %p1958_p5 = pneg %p1957_p2 }
 0x1a7   : > { %v1115_v1 = vpop.f32.mrf.mxu3  ;;  %p1963_p13 = pnand %p1962_p10, %p1958_p5 }
 0x218   : > { %v959_v26 = vpop.xlane.xlu0 %958 }
 0x219   : > { %v960_v27 = vsub.f32 %v955_v24, %v959_v26  ;;  %v1048_v24 = vunpack.c.l.bf16 %v1047_v23 }
 0x21b   : > { %v961_v28 = vmul.f32 1.442695, %v960_v27  ;;  %v1049_v25 = vperm.slane %v1048_v24, 0 }
 0x21d   : > { %1721 = vpow2.f32 %v961_v28 }
 0x223   : > { %v1722_v29 = vpop.eup %1721 }
 0x224   : > { %v963_v30 = vsel %vm956_vm6, %v1722_v29, 0.0 }
 0x225   : > { %964 = vadd.xlane.f32.xlu0 %v963_v30 }
 0x298   : > { %v965_v31 = vpop.xlane.xlu0 %964 }
 0x299   : > { %1723 = vrcp.f32 %v965_v31  ;;  %v977_v35 = vand.u32 2147483648, %v965_v31  ;;  %v975_v4 = vand.u32 2147483647, %v965_v31  ;;  %vm971_vm8 = vweird.f32 %v965_v31 }
 0x29b   : > { %v978_v37 = vor.u32 1.1754944e-38, %v977_v35  ;;  %vm976_vm10 = vcmp.eq.f32.partialorder %v975_v4, 8.507059e+37 }
 0x29f   : > { %v1724_v32 = vpop.eup %1723 }
 0x2a0   : > { %v967_v33 = vmul.f32 %v1724_v32, %v965_v31  ;;  %vm972_vm7 = vweird.f32 %v1724_v32 }
 0x2a1   : > { %vm973_vm9 = vmor %vm971_vm8, %vm972_vm7 }
 0x2a2   : > { %v968_v34 = vsub.f32 1.0, %v967_v33 }
 0x2a4   : > { %v969_v3 = vmul.f32 %v1724_v32, %v968_v34 }
 0x2a6   : > { %v970_v36 = vadd.f32 %v1724_v32, %v969_v3 }
 0x2a8   : > { %v974_v38 = vsel %vm973_vm9, %v1724_v32, %v970_v36 }
 0x2a9   : > { %v979_v40 = vsel %vm976_vm10, %v978_v37, %v974_v38 }
 0x2aa   : > { %v980_v41 = vmul.f32 %v1722_v29, %v979_v40  ;;  %v1117_v29 = vld [vmem:[%s2737_s18] sm:$0x1] }
 0x2ab   : > { %v1118_v30 = vunpack.c.l.bf16 %v1117_v29 }
 0x2ac   : > { %v984_v42 = vmul.f32 %v982_v39, %v980_v41 }
 0x2ad   : > { %v1119_v31 = vperm.slane %v1118_v30, 0 }
 0x2ae   : > { %v985_v43 = vsel %vm956_vm6, %v984_v42, 0.0 }
 0x2af   : > { %986 = vadd.xlane.f32.xlu1 %v985_v43 }
 0x322   : > { %v987_v47 = vpop.xlane.xlu1 %986 }
 0x323   : > { %1725 = vrcp.f32 %v987_v47  ;;  %v999_v51 = vand.u32 2147483648, %v987_v47  ;;  %v997_v2 = vand.u32 2147483647, %v987_v47  ;;  %vm993_vm12 = vweird.f32 %v987_v47 }
 0x325   : > { %v1000_v54 = vor.u32 1.1754944e-38, %v999_v51  ;;  %vm998_vm14 = vcmp.eq.f32.partialorder %v997_v2, 8.507059e+37 }
 0x329   : > { %v1726_v48 = vpop.eup %1725 }
 0x32a   : > { %v989_v49 = vmul.f32 %v1726_v48, %v987_v47  ;;  %vm994_vm11 = vweird.f32 %v1726_v48 }
 0x32b   : > { %vm995_vm13 = vmor %vm993_vm12, %vm994_vm11 }
 0x32c   : > { %v990_v50 = vsub.f32 1.0, %v989_v49 }
 0x32e   : > { %v991_v52 = vmul.f32 %v1726_v48, %v990_v50 }
 0x330   : > { %v992_v53 = vadd.f32 %v1726_v48, %v991_v52 }
 0x332   : > { %v996_v55 = vsel %vm995_vm13, %v1726_v48, %v992_v53 }
 0x333   : > { %v1001_v56 = vsel %vm998_vm14, %v1000_v54, %v996_v55 }
 0x334   : > { %v2538_v57 = vmul.f32 %v1001_v56, %v984_v42 }
 0x336   : > { %v1005_v58 = vpack.c.bf16 %v2538_v57, %v2538_v57 }
 0x338   : > { %1501 = vmatmul.msk.bf16.vlgmr.msra.gmra.mxu1 %vm956_vm6, %v1005_v58 }
 0x3b5   : > { %v1024_v14 = vpop.f32.mrf.mxu1 }
 0x3b6   : > { %v1031_v15 = vmul.f32 %v1030_v10, %v1024_v14  ;;  %v1059_v16 = vpack.c.bf16 %v1024_v14, %v1024_v14 }
 0x3b8   : > { %1510 = vmatmul.msk.bf16.vlgmr.msra.gmra.mxu2 %vm831_vm0, %v1059_v16  ;;  %v1037_v18 = vadd.f32 %v1036_v13, %v1031_v15 }
 0x3ba   : > { %v1043_v19 = vadd.f32 %v1042_v17, %v1037_v18 }
 0x3bc   : > { %v1044_v20 = vsel %vm831_vm0, %v1043_v19, 0.0  ;;  %vm1122_vm0 = vcmask 257024  }
 0x3bd   : > { %1045 = vadd.xlane.f32.xlu1 %v1044_v20  ;;  %v1026_v7 = vpop.f32.mrf.mxu1 }
 0x430   : > { %v1046_v26 = vpop.xlane.xlu1 %1045 }
 0x431   : > { %v1050_v27 = vadd.f32 %v1049_v25, %v1046_v26 }
 0x433   : > { %v1051_v28 = vmul.f32 0.5, %v1050_v27 }
 0x435   : > { %1727 = vtanh.f32 %v1051_v28 }
 0x43b   : > { %v1728_v32 = vpop.eup %1727  ;;  %v1088_v33 = vpop.f32.mrf.mxu2 }
 0x43c   : > { %v1053_v34 = vmul.f32 0.5, %v1728_v32  ;;  %v1114_v35 = vadd.f32 %v1113_v21, %v1088_v33 }
 0x43e   : > { %v1120_v3 = vadd.f32 %v1119_v31, %v1114_v35  ;;  %v1054_v4 = vadd.f32 0.5, %v1053_v34 }
 0x440   : > { %v1121_v36 = vpack.c.bf16 %v1120_v3, %v1120_v3  ;;  %v1124_v37 = vsub.f32 1.0, %v1054_v4  ;;  %1135 = vst.msk [vmem:[%s2481_s21] sm:$0xff] %vm1134_vm15, %v1054_v4 }
 0x442   : > { %1127 = vperm.xlu2 %1719, %v1124_v37   ;;  %1123 = vst.msk [vmem:[%s777_s2] sm:$0xf] %vm1122_vm0, %v1121_v36 }
 0x443   : > { %v1090_v38 = vpop.f32.mrf.mxu2 }
 0x444   : > { %1966 = shalt.err (!%p1963_p13)
}
 0x445   : > { %1557 = dma.vmem_to_hbm [thread:$0]  (%p2397_p12), %s1165_s17, 64, %s1167_s13, %s1137_s22  }
 0x446   : > { %s2741_s23 = sld [smem:[#allocation51_spill]]  ;;  %s1180_s24 = sshll.u32 %s784_s3, 4  ;;  %s1181_s24 = int_to_ptr.vmem [resolvable:$true] %s1180_s24 }
 0x447   : > { %s1142_s29 = scalar_lea.sflag [#allocation19], %s2448_s25 }
 0x44c   : > { %s1178_s26 = scalar_lea.hbm %s2741_s23, %s1523_s5  ;;  %s1987_s13 = scalar_lea.hbm %s2741_s23, 16 }
 0x44d   : > { %s1182_s14 = sshll.u32 %s1178_s26, 4  ;;  %s1183_s14 = int_to_ptr.hbm [resolvable:$true] %s1182_s14 }
 0x44e   : > { %s1981_s10 = sshra.s32 %s1183_s14, 4  ;;  %s1982_s10 = int_to_ptr.hbm [resolvable:$true] %s1981_s10 }
 0x44f   : > { %s1983_s7 = scalar_lea.hbm %s1982_s10, 4  ;;  %p1988_p9 = scmp.lt.s32.totalorder %s1982_s10, %s2741_s23 }
 0x450   : > { %p1984_p4 = scmp.ne.s32.totalorder %s1982_s10, %s1983_s7  ;;  %p1989_p1 = scmp.lt.s32.totalorder %s1987_s13, %s1983_s7 }
 0x452   : > { %p1985_p0 = pnand %p1984_p4, %p2397_p12  ;;  %p1990_p11 = por %p1989_p1, %p1988_p9 }
 0x454   : > { %p1986_p3 = pneg %p1985_p0 }
 0x456   : > { %p1991_p2 = pnand %p1990_p11, %p1986_p3 }
 0x49c   : > { %v1128_v39 = vpop.permute.xlu2 %1127 }
 0x49d   : > { %v1130_v40 = vmul.f32 %v1128_v39, %v2538_v57 }
 0x49f   : > { %v1131_v41 = vpack.c.bf16 %v1130_v40, %v1130_v40 }
 0x4a1   : > { %1133 = vst.msk [vmem:[%s784_s3] sm:$0xf] %vm953_vm5, %v1131_v41 }
 0x4a2   : > { %1994 = shalt.err (!%p1991_p2)
}
 0x4a3   : > { %1558 = dma.vmem_to_hbm [thread:$0]  (%p2397_p12), %s1181_s24, 64, %s1183_s14, %s1142_s29  }
 0x4a4 PF: > { %s2742_s25 = sld [smem:[#allocation28_spill]]  ;;  %p1598_p5 = scmp.ge.s32.totalorder %s2117_s20, 2 }
 0x4a6   : > { %p1585_p6 = pnand %p1598_p5, %p2403_p7 }
 0x4a8   : > { %p1586_p8 = pneg %p1585_p6 }
 0x4aa   : > { %s1197_s3 = sand.u32 1, %s2742_s25  }
 0x4ab   : > { %s1198_s12 = scalar_lea.sflag [#allocation7], %s1197_s3 }
 0x4ac   : > { %2068 = dma.done.wait (%p1586_p8), %s1198_s12, 64  }
 0x4ad   : > { %2070 = vsyncadd (%p1586_p8), %s1198_s12, 4294967232  ;;  %s1208_s18 = scalar_lea.sflag [#allocation19], %s1197_s3 }
 0x4ae   : > { %2072 = dma.done.wait (%p1586_p8), %s1208_s18, 64  }
 0x4af   : > { %2074 = vsyncadd (%p1586_p8), %s1208_s18, 4294967232  ;;  %s46_s20 = sadd.s32 1, %s2117_s20   ;;  %s2744_s8 = sld [smem:[#allocation32_spill]] }
 0x4b0   : > { %p43_p10 = scmp.ge.s32.totalorder %s46_s20, 6   ;;  %s2745_s21 = sld [smem:[#allocation33_spill]] }
 0x4b1   : > { %s2746_s26 = smov %s2081_s27  ;;  %s2747_s27 = smov %s2085_s28 }
 0x4b2   : > { %s2748_s28 = smov %s2414_s30  ;;  %s2749_s29 = smov %s2093_s11 }
 0x4b3   : > { %s2750_s11 = smov %s2097_s0  ;;  %s2751_s0 = smov %s2411_s4 }
 0x4b4   : > { %s2752_s30 = smov %s2109_s19  ;;  %s2753_s18 = smov %s2113_s1 }
 0x4b5   : > { %s2754_s19 = smov %s2744_s8  ;;  %45 = sbr.rel (!%p43_p10) target bundleno = 34 (0x22), region = 226 }
 0x4b6   : > { %s2755_s1 = smov %s2745_s21 }
 0x4ba   :  { %1225 = vsyncpa [#allocation6], 1 }
 0x4bb   :  { %1227 = vsyncpa [#allocation6 + $0x1], 1 }
 0x4bc   :  { %1228 = vsyncpa [#allocation9], 1 }
 0x4bd   :  { %1230 = vsyncpa [#allocation9 + $0x1], 1 }
 0x4be   :  { %1231 = vsyncpa [#allocation12], 1 }
 0x4bf   :  { %1233 = vsyncpa [#allocation12 + $0x1], 1 }
 0x4c0   :  { %1234 = vsyncpa [#allocation15], 1 }
 0x4c1   :  { %1235 = vsyncpa [#allocation7], 1 }
 0x4c2   :  { %1237 = vsyncpa [#allocation7 + $0x1], 1 }
 0x4c3   :  { %1238 = vsyncpa [#allocation19], 1 }
 0x4c4   :  { %1240 = vsyncpa [#allocation19 + $0x1], 1 }

</bundles_post_ra>
